<compile_context>
chip_gen: v6e
topology: v6e:2x2x1
jax: 0.10.0
libtpu: 0.0.40
codegen_flags: <defaults>
</compile_context>

<pallas_src>
import functools

import jax
import jax.numpy as jnp
from jax.experimental import pallas as pl
from jax.experimental.pallas import tpu as pltpu

NC = 80
LOSS_GAIN = {"class": 1.0, "bbox": 5.0, "giou": 2.0}
LANE = 128
MAX_MATCHED = 128          # static column budget for matched boxes / logits
TILE_ROWS_MAX = 512        # max sublane rows of flattened logits per grid step
NEG_FILL = -1e4            # pad value whose focal(y=0) loss is exactly 0


def _round_up(x, m):
    return ((x + m - 1) // m) * m


# ---------------------------------------------------------------------------
# Fused kernel: focal(class) baseline+correction, L1, GIoU -> one (1,128) row.
# ---------------------------------------------------------------------------
def _motr_loss_kernel(nm_ref, logits_ref, small_ref, out_ref, acc_ref, *,
                      alpha, gain_class, gain_bbox, gain_giou, eps):
    pid = pl.program_id(0)

    @pl.when(pid == 0)
    def _():
        acc_ref[...] = jnp.zeros_like(acc_ref)

    # ---- focal baseline: every element treated as a negative (y = 0) ----
    x = logits_ref[...]                          # [tile_rows, 128] f32
    e = jnp.exp(-jnp.abs(x))                     # shared exp feeds BCE log + sigmoid
    inv = pl.reciprocal(1.0 + e, approx=True)    # EUP vrcp, cheap slot
    p = jnp.where(x >= 0.0, inv, e * inv)        # sigmoid(x), always >= 0 here
    bce0 = jnp.maximum(x, 0.0) + jnp.log1p(e)    # stable BCE-with-logits, y = 0
    loss0 = bce0 * (p * jnp.sqrt(p)) * (1.0 - alpha)   # (1-p_t)^1.5, p_t = 1-p
    # Lane-wise partial sums only (sublane reduce); lane reduce deferred to end.
    acc_ref[...] += jnp.sum(loss0, axis=0, keepdims=True)

    @pl.when(pid == pl.num_programs(0) - 1)
    def _():
        num_matched = nm_ref[0]
        sm = small_ref[...]                      # [9, Mp] f32
        mp = sm.shape[1]
        valid = (jax.lax.broadcasted_iota(jnp.int32, (1, mp), 1)
                 < num_matched).astype(jnp.float32)

        # ---- per-match correction: (y=1 loss) - (y=0 loss) on matched logits
        xm = sm[8:9, :]
        em = jnp.exp(-jnp.abs(xm))
        l1p = jnp.log1p(em)
        pm = jnp.where(xm >= 0.0, 1.0 / (1.0 + em), em / (1.0 + em))   # exact
        m1p = jnp.maximum(1.0 - pm, 0.0)         # clamp -> no sqrt(<0) NaN
        m1n = jnp.maximum(pm, 0.0)
        corr = ((jnp.maximum(xm, 0.0) - xm + l1p) * (m1p * jnp.sqrt(m1p)) * alpha
                - (jnp.maximum(xm, 0.0) + l1p) * (m1n * jnp.sqrt(m1n)) * (1.0 - alpha))
        loss_cls = (jnp.sum(acc_ref[...]) + jnp.sum(corr * valid)) * gain_class

        # ---- matched-box L1 + GIoU, lane-dense [*, Mp] layout ----
        pb = sm[0:4, :]                          # pred xywh
        gb = sm[4:8, :]                          # gt   xywh
        # Zero-padded columns -> |diff| == 0, no mask needed.
        loss_l1 = jnp.sum(jnp.abs(pb - gb)) * gain_bbox

        px, py, pw, ph = sm[0:1, :], sm[1:2, :], sm[2:3, :], sm[3:4, :]
        gx, gy, gw, gh = sm[4:5, :], sm[5:6, :], sm[6:7, :], sm[7:8, :]
        b1x1, b1x2 = px - pw * 0.5, px + pw * 0.5
        b1y1, b1y2 = py - ph * 0.5, py + ph * 0.5
        b2x1, b2x2 = gx - gw * 0.5, gx + gw * 0.5
        b2y1, b2y2 = gy - gh * 0.5, gy + gh * 0.5

        inter = (jnp.maximum(jnp.minimum(b1x2, b2x2) - jnp.maximum(b1x1, b2x1), 0.0)
                 * jnp.maximum(jnp.minimum(b1y2, b2y2) - jnp.maximum(b1y1, b2y1), 0.0))
        union = pw * ph + gw * gh - inter + eps
        c_area = ((jnp.maximum(b1x2, b2x2) - jnp.minimum(b1x1, b2x1))
                  * (jnp.maximum(b1y2, b2y2) - jnp.minimum(b1y1, b2y1)) + eps)
        rcp_u = pl.reciprocal(union)             # exact reciprocal-multiply
        rcp_c = pl.reciprocal(c_area)
        giou = inter * rcp_u - 1.0 + union * rcp_c
        loss_giou = jnp.sum((1.0 - giou) * valid) * gain_giou

        # Single lane-dense output row: [loss_class, loss_bbox, loss_giou, 0...].
        lane = jax.lax.broadcasted_iota(jnp.int32, out_ref.shape, 1)
        out_ref[...] = (jnp.where(lane == 0, loss_cls, 0.0)
                        + jnp.where(lane == 1, loss_l1, 0.0)
                        + jnp.where(lane == 2, loss_giou, 0.0))


# ---------------------------------------------------------------------------
# Wrapper reproducing MOTRLoss.forward (last decoder layer, given match_indices)
# ---------------------------------------------------------------------------
def motr_loss_forward(pred_bboxes, pred_scores, batch, match_indices):
    gt_cls = batch["cls"].astype(jnp.int32)          # [num_gts]
    gt_bboxes = batch["bboxes"].astype(jnp.float32)  # [num_gts, 4]

    # ---- _get_index glue (plain JAX, static shapes) ----
    batch_idx = jnp.concatenate(
        [jnp.full(src.shape, i, jnp.int32) for i, (src, _) in enumerate(match_indices)])
    src_idx = jnp.concatenate([src.astype(jnp.int32) for src, _ in match_indices])
    dst_idx = jnp.concatenate([dst.astype(jnp.int32) for _, dst in match_indices])
    m = int(src_idx.shape[0])                        # number of matched objects
    assert m <= MAX_MATCHED, "increase MAX_MATCHED"
    mp = MAX_MATCHED

    last_scores = pred_scores[-1].astype(jnp.float32)     # [B, Q, NC]

    # Matched boxes + matched-class logit in ONE lane-dense [9, Mp] block:
    # rows 0-3 pred xywh, rows 4-7 gt xywh, row 8 matched logits; zero-pad cols.
    pred_b = pred_bboxes[-1][batch_idx, src_idx].astype(jnp.float32)   # [M, 4]
    gt_b = gt_bboxes[dst_idx]                                          # [M, 4]
    matched_cls = gt_cls[dst_idx]                                      # [M]
    matched_logit = last_scores[batch_idx, src_idx, matched_cls]       # [M]
    small = jnp.concatenate([pred_b, gt_b, matched_logit[:, None]], axis=1)  # [M, 9]
    small = jnp.pad(small, ((0, mp - m), (0, 0))).T                    # [9, Mp]

    # Flattened lane-dense logits (no 80 -> 128 lane pad): rows of 128 elems.
    flat = last_scores.reshape(-1)
    total = int(flat.shape[0])
    n_rows = (total + LANE - 1) // LANE
    n_tiles = max(1, (n_rows + TILE_ROWS_MAX - 1) // TILE_ROWS_MAX)
    tile_rows = _round_up((n_rows + n_tiles - 1) // n_tiles, 8)
    n_rows_pad = n_tiles * tile_rows
    pad = n_rows_pad * LANE - total
    if pad:
        flat = jnp.pad(flat, (0, pad), constant_values=NEG_FILL)  # focal(y=0) == 0
    logits2d = flat.reshape(n_rows_pad, LANE)

    nm = jnp.array([m], dtype=jnp.int32)   # scalar-prefetch: mask is data-dependent

    kernel = functools.partial(
        _motr_loss_kernel, alpha=0.25,
        gain_class=float(LOSS_GAIN["class"]), gain_bbox=float(LOSS_GAIN["bbox"]),
        gain_giou=float(LOSS_GAIN["giou"]), eps=1e-7)

    cost = pl.CostEstimate(
        flops=int(20 * total + 80 * mp),
        transcendentals=int(4 * total + 6 * mp),
        bytes_accessed=int(4 * (total + 9 * mp + LANE) + 4))

    out = pl.pallas_call(
        kernel,
        out_shape=jax.ShapeDtypeStruct((1, LANE), jnp.float32),
        grid_spec=pltpu.PrefetchScalarGridSpec(
            num_scalar_prefetch=1,
            grid=(n_tiles,),
            in_specs=[
                pl.BlockSpec((tile_rows, LANE), lambda i, nm_ref: (i, 0)),
                pl.BlockSpec((9, mp), lambda i, nm_ref: (0, 0)),
            ],
            out_specs=pl.BlockSpec((1, LANE), lambda i, nm_ref: (0, 0)),
            scratch_shapes=[pltpu.VMEM((1, LANE), jnp.float32)],
        ),
        compiler_params=pltpu.CompilerParams(dimension_semantics=("arbitrary",)),
        cost_estimate=cost,
    )(nm, logits2d, small)

    total_loss = {
        "loss_class": out[0, 0],
        "loss_bbox": out[0, 1],
        "loss_giou": out[0, 2],
    }
    # TODO(synk): aux_loss branch needs HungarianMatcher (scipy linear_sum_assignment)
    # per auxiliary decoder layer; there is no clean Pallas equivalent, so aux losses
    # are omitted here.
    return [total_loss, m]


if __name__ == "__main__":
    key = jax.random.PRNGKey(0)
    k1, k2, k3, k4 = jax.random.split(key, 4)

    L, B, Q = 3, 2, 8  # decoder layers, batch, queries
    pred_bboxes = jax.random.uniform(k1, (L, B, Q, 4), jnp.float32, 0.1, 0.6)
    pred_scores = jax.random.normal(k2, (L, B, Q, NC), jnp.float32)

    gt_groups = [3, 2]
    num_gts = sum(gt_groups)
    gt_cls = jnp.array([1, 5, 10, 3, 7], dtype=jnp.int32)
    gt_bboxes = jax.random.uniform(k3, (num_gts, 4), jnp.float32, 0.1, 0.6)
    batch = {"cls": gt_cls, "bboxes": gt_bboxes, "gt_groups": gt_groups}

    # match_indices: per-image (pred query idx, flattened gt idx)
    match_indices = [
        (jnp.array([0, 2, 5], dtype=jnp.int32), jnp.array([0, 1, 2], dtype=jnp.int32)),
        (jnp.array([1, 4], dtype=jnp.int32), jnp.array([3, 4], dtype=jnp.int32)),
    ]

    total_loss, num_trackobject = motr_loss_forward(
        pred_bboxes, pred_scores, batch, match_indices
    )
    jax.block_until_ready(total_loss)
    print("KERNEL_OK")
</pallas_src>

<mosaic_0001>
module attributes {stable_mosaic.version = 11 : i64} {
  func.func @_motr_loss_kernel(%arg0: i32, %arg1: memref<1xi32, #tpu.memory_space<smem>>, %arg2: memref<16x128xf32, #tpu.memory_space<vmem>>, %arg3: memref<9x128xf32, #tpu.memory_space<vmem>>, %arg4: memref<1x128xf32, #tpu.memory_space<vmem>>, %arg5: memref<1x128xf32, #tpu.memory_space<vmem>>) attributes {dimension_semantics = [#tpu.dimension_semantics<arbitrary>], iteration_bounds = array<i64: 1>, scalar_prefetch = 1 : i64, scratch_operands = 1 : i64, tpu.core_type = #tpu.core_type<tc>, window_params = [{transform_indices = @transform_0, window_bounds = array<i64: 16, 128>}, {pipeline_mode = #tpu.pipeline_mode<synchronous>, transform_indices = @transform_1, window_bounds = array<i64: 9, 128>}, {pipeline_mode = #tpu.pipeline_mode<synchronous>, transform_indices = @transform_2, window_bounds = array<i64: 1, 128>}]} {
    %c0_i32 = arith.constant 0 : i32
    %0 = arith.cmpi eq, %arg0, %c0_i32 : i32
    %1 = arith.extui %0 : i1 to i32
    %c0_i32_0 = arith.constant 0 : i32
    %2 = arith.cmpi ne, %1, %c0_i32_0 : i32
    scf.if %2 {
      %cst_13 = arith.constant 0.000000e+00 : f32
      %32 = vector.broadcast %cst_13 : f32 to vector<1x128xf32>
      %c0_14 = arith.constant 0 : index
      %c0_15 = arith.constant 0 : index
      %33 = vector.load %arg5[%c0_14, %c0_15] : memref<1x128xf32, #tpu.memory_space<vmem>>, vector<1x128xf32>
      tpu.vector_store %arg5[%c0_14, %c0_15], %32 {strides = array<i32>} : memref<1x128xf32, #tpu.memory_space<vmem>>, vector<1x128xf32>,
    } else {
    }
    %c0 = arith.constant 0 : index
    %c0_1 = arith.constant 0 : index
    %3 = vector.load %arg2[%c0, %c0_1] : memref<16x128xf32, #tpu.memory_space<vmem>>, vector<16x128xf32>
    %4 = math.absf %3 : vector<16x128xf32>
    %cst = arith.constant 0.000000e+00 : f32
    %5 = vector.broadcast %cst : f32 to vector<16x128xf32>
    %6 = arith.subf %5, %4 : vector<16x128xf32>
    %7 = math.exp %6 : vector<16x128xf32>
    %cst_2 = arith.constant 1.000000e+00 : f32
    %8 = vector.broadcast %cst_2 : f32 to vector<16x128xf32>
    %9 = arith.addf %8, %7 : vector<16x128xf32>
    %10 = tpu.reciprocal %9 {approx = true} : vector<16x128xf32> -> vector<16x128xf32>
    %cst_3 = arith.constant 0.000000e+00 : f32
    %11 = vector.broadcast %cst_3 : f32 to vector<16x128xf32>
    %12 = arith.cmpf oge, %3, %11 : vector<16x128xf32>
    %13 = arith.mulf %7, %10 : vector<16x128xf32>
    %14 = arith.select %12, %10, %13 : vector<16x128xi1>, vector<16x128xf32>
    %cst_4 = arith.constant 0.000000e+00 : f32
    %15 = vector.broadcast %cst_4 : f32 to vector<16x128xf32>
    %16 = arith.maximumf %3, %15 : vector<16x128xf32>
    %17 = math.log1p %7 : vector<16x128xf32>
    %18 = arith.addf %16, %17 : vector<16x128xf32>
    %19 = math.sqrt %14 : vector<16x128xf32>
    %20 = arith.mulf %14, %19 : vector<16x128xf32>
    %21 = arith.mulf %18, %20 : vector<16x128xf32>
    %cst_5 = arith.constant 7.500000e-01 : f32
    %22 = vector.broadcast %cst_5 : f32 to vector<16x128xf32>
    %23 = arith.mulf %21, %22 : vector<16x128xf32>
    %c0_6 = arith.constant 0 : index
    %c0_7 = arith.constant 0 : index
    %24 = vector.load %arg5[%c0_6, %c0_7] : memref<1x128xf32, #tpu.memory_space<vmem>>, vector<1x128xf32>
    %cst_8 = arith.constant dense<0.000000e+00> : vector<128xf32>
    %25 = vector.multi_reduction <add>, %23, %cst_8 [0] : vector<16x128xf32> to vector<128xf32>
    %26 = vector.shape_cast %25 : vector<128xf32> to vector<1x128xf32>
    %27 = arith.addf %24, %26 : vector<1x128xf32>
    %c0_9 = arith.constant 0 : index
    %c0_10 = arith.constant 0 : index
    %28 = vector.load %arg5[%c0_9, %c0_10] : memref<1x128xf32, #tpu.memory_space<vmem>>, vector<1x128xf32>
    tpu.vector_store %arg5[%c0_9, %c0_10], %27 {strides = array<i32>} : memref<1x128xf32, #tpu.memory_space<vmem>>, vector<1x128xf32>,
    %c0_i32_11 = arith.constant 0 : i32
    %29 = arith.cmpi eq, %arg0, %c0_i32_11 : i32
    %30 = arith.extui %29 : i1 to i32
    %c0_i32_12 = arith.constant 0 : i32
    %31 = arith.cmpi ne, %30, %c0_i32_12 : i32
    scf.if %31 {
      %c0_13 = arith.constant 0 : index
      %32 = memref.load %arg1[%c0_13] : memref<1xi32, #tpu.memory_space<smem>>
      %c0_14 = arith.constant 0 : index
      %c0_15 = arith.constant 0 : index
      %33 = vector.load %arg3[%c0_14, %c0_15] : memref<9x128xf32, #tpu.memory_space<vmem>>, vector<9x128xf32>
      %34 = tpu.iota {dimensions = array<i32: 1>} : vector<1x128xi32>
      %35 = vector.broadcast %32 : i32 to vector<1x128xi32>
      %36 = arith.cmpi slt, %34, %35 : vector<1x128xi32>
      %37 = arith.extui %36 : vector<1x128xi1> to vector<1x128xi32>
      %38 = arith.sitofp %37 : vector<1x128xi32> to vector<1x128xf32>
      %39 = vector.extract_strided_slice %33 {offsets = [8, 0], sizes = [1, 128], strides = [1, 1]} : vector<9x128xf32> to vector<1x128xf32>
      %40 = math.absf %39 : vector<1x128xf32>
      %cst_16 = arith.constant 0.000000e+00 : f32
      %41 = vector.broadcast %cst_16 : f32 to vector<1x128xf32>
      %42 = arith.subf %41, %40 : vector<1x128xf32>
      %43 = math.exp %42 : vector<1x128xf32>
      %44 = math.log1p %43 : vector<1x128xf32>
      %cst_17 = arith.constant 0.000000e+00 : f32
      %45 = vector.broadcast %cst_17 : f32 to vector<1x128xf32>
      %46 = arith.cmpf oge, %39, %45 : vector<1x128xf32>
      %cst_18 = arith.constant 1.000000e+00 : f32
      %47 = vector.broadcast %cst_18 : f32 to vector<1x128xf32>
      %48 = arith.addf %47, %43 : vector<1x128xf32>
      %cst_19 = arith.constant 1.000000e+00 : f32
      %49 = vector.broadcast %cst_19 : f32 to vector<1x128xf32>
      %50 = arith.divf %49, %48 : vector<1x128xf32>
      %cst_20 = arith.constant 1.000000e+00 : f32
      %51 = vector.broadcast %cst_20 : f32 to vector<1x128xf32>
      %52 = arith.addf %51, %43 : vector<1x128xf32>
      %53 = arith.divf %43, %52 : vector<1x128xf32>
      %54 = arith.select %46, %50, %53 : vector<1x128xi1>, vector<1x128xf32>
      %cst_21 = arith.constant 1.000000e+00 : f32
      %55 = vector.broadcast %cst_21 : f32 to vector<1x128xf32>
      %56 = arith.subf %55, %54 : vector<1x128xf32>
      %cst_22 = arith.constant 0.000000e+00 : f32
      %57 = vector.broadcast %cst_22 : f32 to vector<1x128xf32>
      %58 = arith.maximumf %56, %57 : vector<1x128xf32>
      %cst_23 = arith.constant 0.000000e+00 : f32
      %59 = vector.broadcast %cst_23 : f32 to vector<1x128xf32>
      %60 = arith.maximumf %54, %59 : vector<1x128xf32>
      %cst_24 = arith.constant 0.000000e+00 : f32
      %61 = vector.broadcast %cst_24 : f32 to vector<1x128xf32>
      %62 = arith.maximumf %39, %61 : vector<1x128xf32>
      %63 = arith.subf %62, %39 : vector<1x128xf32>
      %64 = arith.addf %63, %44 : vector<1x128xf32>
      %65 = math.sqrt %58 : vector<1x128xf32>
      %66 = arith.mulf %58, %65 : vector<1x128xf32>
      %67 = arith.mulf %64, %66 : vector<1x128xf32>
      %cst_25 = arith.constant 2.500000e-01 : f32
      %68 = vector.broadcast %cst_25 : f32 to vector<1x128xf32>
      %69 = arith.mulf %67, %68 : vector<1x128xf32>
      %cst_26 = arith.constant 0.000000e+00 : f32
      %70 = vector.broadcast %cst_26 : f32 to vector<1x128xf32>
      %71 = arith.maximumf %39, %70 : vector<1x128xf32>
      %72 = arith.addf %71, %44 : vector<1x128xf32>
      %73 = math.sqrt %60 : vector<1x128xf32>
      %74 = arith.mulf %60, %73 : vector<1x128xf32>
      %75 = arith.mulf %72, %74 : vector<1x128xf32>
      %cst_27 = arith.constant 7.500000e-01 : f32
      %76 = vector.broadcast %cst_27 : f32 to vector<1x128xf32>
      %77 = arith.mulf %75, %76 : vector<1x128xf32>
      %78 = arith.subf %69, %77 : vector<1x128xf32>
      %c0_28 = arith.constant 0 : index
      %c0_29 = arith.constant 0 : index
      %79 = vector.load %arg5[%c0_28, %c0_29] : memref<1x128xf32, #tpu.memory_space<vmem>>, vector<1x128xf32>
      %80 = vector.shape_cast %79 : vector<1x128xf32> to vector<1x1x128xf32>
      %cst_30 = arith.constant dense<0.000000e+00> : vector<1xf32>
      %81 = vector.multi_reduction <add>, %80, %cst_30 [1, 2] : vector<1x1x128xf32> to vector<1xf32>
      %82 = vector.shape_cast %81 : vector<1xf32> to vector<1x1x1xf32>
      %83 = vector.extract %82[0, 0, 0] : f32 from vector<1x1x1xf32>
      %84 = arith.mulf %78, %38 : vector<1x128xf32>
      %85 = vector.shape_cast %84 : vector<1x128xf32> to vector<1x1x128xf32>
      %cst_31 = arith.constant dense<0.000000e+00> : vector<1xf32>
      %86 = vector.multi_reduction <add>, %85, %cst_31 [1, 2] : vector<1x1x128xf32> to vector<1xf32>
      %87 = vector.shape_cast %86 : vector<1xf32> to vector<1x1x1xf32>
      %88 = vector.extract %87[0, 0, 0] : f32 from vector<1x1x1xf32>
      %89 = arith.addf %83, %88 : f32
      %cst_32 = arith.constant 1.000000e+00 : f32
      %90 = arith.mulf %89, %cst_32 : f32
      %91 = vector.extract_strided_slice %33 {offsets = [0, 0], sizes = [4, 128], strides = [1, 1]} : vector<9x128xf32> to vector<4x128xf32>
      %92 = vector.extract_strided_slice %33 {offsets = [4, 0], sizes = [4, 128], strides = [1, 1]} : vector<9x128xf32> to vector<4x128xf32>
      %93 = arith.subf %91, %92 : vector<4x128xf32>
      %94 = math.absf %93 : vector<4x128xf32>
      %95 = vector.shape_cast %94 : vector<4x128xf32> to vector<1x4x128xf32>
      %cst_33 = arith.constant dense<0.000000e+00> : vector<1xf32>
      %96 = vector.multi_reduction <add>, %95, %cst_33 [1, 2] : vector<1x4x128xf32> to vector<1xf32>
      %97 = vector.shape_cast %96 : vector<1xf32> to vector<1x1x1xf32>
      %98 = vector.extract %97[0, 0, 0] : f32 from vector<1x1x1xf32>
      %cst_34 = arith.constant 5.000000e+00 : f32
      %99 = arith.mulf %98, %cst_34 : f32
      %100 = vector.extract_strided_slice %33 {offsets = [0, 0], sizes = [1, 128], strides = [1, 1]} : vector<9x128xf32> to vector<1x128xf32>
      %101 = vector.extract_strided_slice %33 {offsets = [1, 0], sizes = [1, 128], strides = [1, 1]} : vector<9x128xf32> to vector<1x128xf32>
      %102 = vector.extract_strided_slice %33 {offsets = [2, 0], sizes = [1, 128], strides = [1, 1]} : vector<9x128xf32> to vector<1x128xf32>
      %103 = vector.extract_strided_slice %33 {offsets = [3, 0], sizes = [1, 128], strides = [1, 1]} : vector<9x128xf32> to vector<1x128xf32>
      %104 = vector.extract_strided_slice %33 {offsets = [4, 0], sizes = [1, 128], strides = [1, 1]} : vector<9x128xf32> to vector<1x128xf32>
      %105 = vector.extract_strided_slice %33 {offsets = [5, 0], sizes = [1, 128], strides = [1, 1]} : vector<9x128xf32> to vector<1x128xf32>
      %106 = vector.extract_strided_slice %33 {offsets = [6, 0], sizes = [1, 128], strides = [1, 1]} : vector<9x128xf32> to vector<1x128xf32>
      %107 = vector.extract_strided_slice %33 {offsets = [7, 0], sizes = [1, 128], strides = [1, 1]} : vector<9x128xf32> to vector<1x128xf32>
      %cst_35 = arith.constant 5.000000e-01 : f32
      %108 = vector.broadcast %cst_35 : f32 to vector<1x128xf32>
      %109 = arith.mulf %102, %108 : vector<1x128xf32>
      %110 = arith.subf %100, %109 : vector<1x128xf32>
      %cst_36 = arith.constant 5.000000e-01 : f32
      %111 = vector.broadcast %cst_36 : f32 to vector<1x128xf32>
      %112 = arith.mulf %102, %111 : vector<1x128xf32>
      %113 = arith.addf %100, %112 : vector<1x128xf32>
      %cst_37 = arith.constant 5.000000e-01 : f32
      %114 = vector.broadcast %cst_37 : f32 to vector<1x128xf32>
      %115 = arith.mulf %103, %114 : vector<1x128xf32>
      %116 = arith.subf %101, %115 : vector<1x128xf32>
      %cst_38 = arith.constant 5.000000e-01 : f32
      %117 = vector.broadcast %cst_38 : f32 to vector<1x128xf32>
      %118 = arith.mulf %103, %117 : vector<1x128xf32>
      %119 = arith.addf %101, %118 : vector<1x128xf32>
      %cst_39 = arith.constant 5.000000e-01 : f32
      %120 = vector.broadcast %cst_39 : f32 to vector<1x128xf32>
      %121 = arith.mulf %106, %120 : vector<1x128xf32>
      %122 = arith.subf %104, %121 : vector<1x128xf32>
      %cst_40 = arith.constant 5.000000e-01 : f32
      %123 = vector.broadcast %cst_40 : f32 to vector<1x128xf32>
      %124 = arith.mulf %106, %123 : vector<1x128xf32>
      %125 = arith.addf %104, %124 : vector<1x128xf32>
      %cst_41 = arith.constant 5.000000e-01 : f32
      %126 = vector.broadcast %cst_41 : f32 to vector<1x128xf32>
      %127 = arith.mulf %107, %126 : vector<1x128xf32>
      %128 = arith.subf %105, %127 : vector<1x128xf32>
      %cst_42 = arith.constant 5.000000e-01 : f32
      %129 = vector.broadcast %cst_42 : f32 to vector<1x128xf32>
      %130 = arith.mulf %107, %129 : vector<1x128xf32>
      %131 = arith.addf %105, %130 : vector<1x128xf32>
      %132 = arith.minimumf %113, %125 : vector<1x128xf32>
      %133 = arith.maximumf %110, %122 : vector<1x128xf32>
      %134 = arith.subf %132, %133 : vector<1x128xf32>
      %cst_43 = arith.constant 0.000000e+00 : f32
      %135 = vector.broadcast %cst_43 : f32 to vector<1x128xf32>
      %136 = arith.maximumf %134, %135 : vector<1x128xf32>
      %137 = arith.minimumf %119, %131 : vector<1x128xf32>
      %138 = arith.maximumf %116, %128 : vector<1x128xf32>
      %139 = arith.subf %137, %138 : vector<1x128xf32>
      %cst_44 = arith.constant 0.000000e+00 : f32
      %140 = vector.broadcast %cst_44 : f32 to vector<1x128xf32>
      %141 = arith.maximumf %139, %140 : vector<1x128xf32>
      %142 = arith.mulf %136, %141 : vector<1x128xf32>
      %143 = arith.mulf %102, %103 : vector<1x128xf32>
      %144 = arith.mulf %106, %107 : vector<1x128xf32>
      %145 = arith.addf %143, %144 : vector<1x128xf32>
      %146 = arith.subf %145, %142 : vector<1x128xf32>
      %cst_45 = arith.constant 1.000000e-07 : f32
      %147 = vector.broadcast %cst_45 : f32 to vector<1x128xf32>
      %148 = arith.addf %146, %147 : vector<1x128xf32>
      %149 = arith.maximumf %113, %125 : vector<1x128xf32>
      %150 = arith.minimumf %110, %122 : vector<1x128xf32>
      %151 = arith.subf %149, %150 : vector<1x128xf32>
      %152 = arith.maximumf %119, %131 : vector<1x128xf32>
      %153 = arith.minimumf %116, %128 : vector<1x128xf32>
      %154 = arith.subf %152, %153 : vector<1x128xf32>
      %155 = arith.mulf %151, %154 : vector<1x128xf32>
      %cst_46 = arith.constant 1.000000e-07 : f32
      %156 = vector.broadcast %cst_46 : f32 to vector<1x128xf32>
      %157 = arith.addf %155, %156 : vector<1x128xf32>
      %158 = tpu.reciprocal %148 : vector<1x128xf32> -> vector<1x128xf32>
      %159 = tpu.reciprocal %157 : vector<1x128xf32> -> vector<1x128xf32>
      %160 = arith.mulf %142, %158 : vector<1x128xf32>
      %cst_47 = arith.constant 1.000000e+00 : f32
      %161 = vector.broadcast %cst_47 : f32 to vector<1x128xf32>
      %162 = arith.subf %160, %161 : vector<1x128xf32>
      %163 = arith.mulf %148, %159 : vector<1x128xf32>
      %164 = arith.addf %162, %163 : vector<1x128xf32>
      %cst_48 = arith.constant 1.000000e+00 : f32
      %165 = vector.broadcast %cst_48 : f32 to vector<1x128xf32>
      %166 = arith.subf %165, %164 : vector<1x128xf32>
      %167 = arith.mulf %166, %38 : vector<1x128xf32>
      %168 = vector.shape_cast %167 : vector<1x128xf32> to vector<1x1x128xf32>
      %cst_49 = arith.constant dense<0.000000e+00> : vector<1xf32>
      %169 = vector.multi_reduction <add>, %168, %cst_49 [1, 2] : vector<1x1x128xf32> to vector<1xf32>
      %170 = vector.shape_cast %169 : vector<1xf32> to vector<1x1x1xf32>
      %171 = vector.extract %170[0, 0, 0] : f32 from vector<1x1x1xf32>
      %cst_50 = arith.constant 2.000000e+00 : f32
      %172 = arith.mulf %171, %cst_50 : f32
      %173 = tpu.iota {dimensions = array<i32: 1>} : vector<1x128xi32>
      %c0_i32_51 = arith.constant 0 : i32
      %174 = vector.broadcast %c0_i32_51 : i32 to vector<1x128xi32>
      %175 = arith.cmpi eq, %173, %174 : vector<1x128xi32>
      %cst_52 = arith.constant 0.000000e+00 : f32
      %176 = vector.broadcast %90 : f32 to vector<1x128xf32>
      %177 = vector.broadcast %cst_52 : f32 to vector<1x128xf32>
      %178 = arith.select %175, %176, %177 : vector<1x128xi1>, vector<1x128xf32>
      %c1_i32 = arith.constant 1 : i32
      %179 = vector.broadcast %c1_i32 : i32 to vector<1x128xi32>
      %180 = arith.cmpi eq, %173, %179 : vector<1x128xi32>
      %cst_53 = arith.constant 0.000000e+00 : f32
      %181 = vector.broadcast %99 : f32 to vector<1x128xf32>
      %182 = vector.broadcast %cst_53 : f32 to vector<1x128xf32>
      %183 = arith.select %180, %181, %182 : vector<1x128xi1>, vector<1x128xf32>
      %184 = arith.addf %178, %183 : vector<1x128xf32>
      %c2_i32 = arith.constant 2 : i32
      %185 = vector.broadcast %c2_i32 : i32 to vector<1x128xi32>
      %186 = arith.cmpi eq, %173, %185 : vector<1x128xi32>
      %cst_54 = arith.constant 0.000000e+00 : f32
      %187 = vector.broadcast %172 : f32 to vector<1x128xf32>
      %188 = vector.broadcast %cst_54 : f32 to vector<1x128xf32>
      %189 = arith.select %186, %187, %188 : vector<1x128xi1>, vector<1x128xf32>
      %190 = arith.addf %184, %189 : vector<1x128xf32>
      %c0_55 = arith.constant 0 : index
      %c0_56 = arith.constant 0 : index
      %191 = vector.load %arg4[%c0_55, %c0_56] : memref<1x128xf32, #tpu.memory_space<vmem>>, vector<1x128xf32>
      tpu.vector_store %arg4[%c0_55, %c0_56], %190 {strides = array<i32>} : memref<1x128xf32, #tpu.memory_space<vmem>>, vector<1x128xf32>,
    } else {
    }
    return
  }
  func.func @transform_0(%arg0: i32, %arg1: memref<1xi32, #tpu.memory_space<smem>>) -> (i32, i32) {
    %c0_i32 = arith.constant 0 : i32
    %c0_i32_0 = arith.constant 0 : i32
    return %arg0, %c0_i32 : i32, i32
  }
  func.func @transform_1(%arg0: i32, %arg1: memref<1xi32, #tpu.memory_space<smem>>) -> (i32, i32) {
    %c0_i32 = arith.constant 0 : i32
    %c0_i32_0 = arith.constant 0 : i32
    %c0_i32_1 = arith.constant 0 : i32
    return %c0_i32, %c0_i32_0 : i32, i32
  }
  func.func @transform_2(%arg0: i32, %arg1: memref<1xi32, #tpu.memory_space<smem>>) -> (i32, i32) {
    %c0_i32 = arith.constant 0 : i32
    %c0_i32_0 = arith.constant 0 : i32
    %c0_i32_1 = arith.constant 0 : i32
    return %c0_i32, %c0_i32_0 : i32, i32
  }
}

</mosaic_0001>

<bundles_post_ra>
// kernel: tpu_custom_call.1
= control target key start
LH: loop header
LB: loop body
LE: loop exit
PB: predicated region body
PF: predicated region fallthrough
CT: control target
= control target key end

     0   :  { %9 = vsyncpa [#allocation6], 0  ;;  %s540_s0 = inlined_call_operand.<no memory space> [shape: s32[1], index: 0, kind: input, shape index: {}]   ;;  %s541_s1 = inlined_call_operand.hbm [shape: f32[16,128], index: 1, kind: input, shape index: {}]   ;;  %s542_s2 = inlined_call_operand.hbm [shape: f32[9,128], index: 2, kind: input, shape index: {}]   ;;  %s543_s3 = inlined_call_operand.hbm [shape: f32[1,128], index: 3, kind: output, shape index: {}]  }
   0x1   :  { %10 = vsyncpa [#allocation9], 0 }
   0x2   :  { %11 = vsyncpa [#allocation7], 0  ;;  %s427_s12 = smov [#allocation5]  }
   0x3   :  { %s17_s13 = sshll.u32 %s427_s12, 4  ;;  %s18_s13 = int_to_ptr.vmem [resolvable:$true] %s17_s13 }
   0x4   :  { %s369_s14 = scalar_lea.vmem %s18_s13, 256  ;;  %p374_p1 = scmp.lt.s32.totalorder %s18_s13, %s18_s13 }
   0x5   :  { %p370_p0 = scmp.ne.s32.totalorder %s18_s13, %s369_s14  ;;  %p375_p2 = scmp.lt.s32.totalorder %s369_s14, %s369_s14 }
   0x7   :  { %p376_p3 = por %p375_p2, %p374_p1 }
   0x9   :  { %p377_p4 = pnand %p376_p3, %p370_p0 }
   0xb   :  { %380 = shalt.err (!%p377_p4)
}
   0xc   :  { %s428_s15 = smov 128   ;;  %s429_s16 = smov 8  }
   0xd   :  { %23 = dma.hbm_to_vmem [thread:$0]  %s541_s1, 256, %s18_s13, [#allocation6], %s428_s15, %s428_s15, %s429_s16  }
   0xe   :  { %s430_s19 = smov [#allocation8]  }
   0xf   :  { %s29_s20 = sshll.u32 %s430_s19, 4  ;;  %s30_s20 = int_to_ptr.vmem [resolvable:$true] %s29_s20 }
  0x10   :  { %s389_s21 = scalar_lea.vmem %s30_s20, 256  ;;  %p394_p6 = scmp.lt.s32.totalorder %s30_s20, %s30_s20 }
  0x11   :  { %p390_p5 = scmp.ne.s32.totalorder %s30_s20, %s389_s21  ;;  %p395_p7 = scmp.lt.s32.totalorder %s389_s21, %s389_s21 }
  0x13   :  { %p396_p8 = por %p395_p7, %p394_p6 }
  0x15   :  { %p397_p9 = pnand %p396_p8, %p390_p5 }
  0x17   :  { %400 = shalt.err (!%p397_p9)
}
  0x18   :  { %35 = dma.hbm_to_vmem [thread:$0]  %s542_s2, 256, %s30_s20, [#allocation9], %s428_s15, %s428_s15, %s429_s16  }
  0x19   :  { %421 = dma.done.wait [#allocation6], 256  }
  0x1a   :  { %422 = vsyncadd [#allocation6], 4294967040 }
  0x1b   :  { %423 = dma.done.wait [#allocation9], 256  }
  0x1c   :  { %424 = vsyncadd [#allocation9], 4294967040  ;;  %v431_v0 = vmov 0.0   ;;  %v123_v1 = vld [vmem:[#allocation8] sm:$0xff]  ;;  %v460_v2 = vld [vmem:[#allocation5] sm:$0xff]  ;;  %vm207_vm0 = vcmask 1043456   ;;  %v125_v51 = vlaneseq  ;;  %v127_v59 = vstv %s540_s0 }
  0x1d   :  { %46 = vst [vmem:[#allocation2] sm:$0x1] %v431_v0  ;;  %v462_v3 = vld [vmem:[#allocation5 + $0x8] sm:$0xff]  ;;  %v203_v4 = vrot.slane %v123_v1, 4  ;;  %v219_v5 = vmul.f32 0.5, %v123_v1  ;;  %v239_v12 = vrot.slane %v123_v1, 1 }
  0x1e   :  { %v49_v6 = vand.u32 2147483647, %v460_v2  ;;  %v50_v7 = vand.u32 2147483647, %v462_v3  ;;  %v466_v11 = vld [vmem:[#allocation8 + $0x8] sm:$0x1] }
  0x1f   :  { %v205_v8 = vsub.f32 %v123_v1, %v203_v4  ;;  %v221_v9 = vrot.slane %v219_v5, 2  ;;  %v131_v14 = vand.u32 2147483647, %v466_v11  ;;  %v241_v24 = vmul.f32 %v239_v12, %v123_v1  ;;  %s432_s30 = smov [#allocation10]  }
  0x20   :  { %v51_v10 = vsub.f32 0.0, %v49_v6  ;;  %v52_v13 = vsub.f32 0.0, %v50_v7  ;;  %vm61_vm1 = vcmp.ge.f32.partialorder %v460_v2, 0.0  ;;  %v476_v57 = vand.u32 127, %v125_v51  ;;  %s305_s4 = sshll.u32 %s432_s30, 4  ;;  %s306_s4 = int_to_ptr.vmem [resolvable:$true] %s305_s4 }
  0x21   :  { %v206_v15 = vand.u32 2147483647, %v205_v8  ;;  %v223_v16 = vsub.f32 %v123_v1, %v221_v9  ;;  %v224_v17 = vadd.f32 %v221_v9, %v123_v1  ;;  %v132_v20 = vsub.f32 0.0, %v131_v14  ;;  %s401_s5 = scalar_lea.vmem %s306_s4, 16  ;;  %s405_s6 = scalar_lea.vmem %s306_s4, 32 }
  0x22   :  { %v53_v18 = vmul.f32 1.442695, %v51_v10  ;;  %v55_v19 = vmul.f32 1.442695, %v52_v13  ;;  %v243_v33 = vrot.slane %v241_v24, 4  ;;  %vm62_vm2 = vcmp.ge.f32.partialorder %v462_v3, 0.0  ;;  %p402_p10 = scmp.ne.s32.totalorder %s306_s4, %s401_s5  ;;  %p406_p11 = scmp.lt.s32.totalorder %s306_s4, %s306_s4 }
  0x23   :  { %v208_v21 = vsel %vm207_vm0, %v206_v15, 0.0  ;;  %v226_v22 = vrot.slane %v224_v17, 4  ;;  %v230_v23 = vrot.slane %v223_v16, 4  ;;  %v133_v25 = vmul.f32 1.442695, %v132_v20  ;;  %p407_p12 = scmp.lt.s32.totalorder %s405_s6, %s401_s5 }
  0x24   :  { %209 = vadd.xlane.f32.xlu1 %v208_v21  ;;  %331 = vpow2.f32 %v53_v18  ;;  %v245_v38 = vadd.f32 %v243_v33, %v241_v24  ;;  %vm128_vm3 = vcmp.lt.s32.totalorder %v476_v57, %v127_v59  ;;  %vm144_vm4 = vcmp.ge.f32.partialorder %v466_v11, 0.0 }
  0x25   :  { %v228_v26 = vmin.f32 %v224_v17, %v226_v22  ;;  %v232_v27 = vmax.f32 %v223_v16, %v230_v23  ;;  %v251_v28 = vmax.f32 %v224_v17, %v226_v22  ;;  %v252_v29 = vmin.f32 %v223_v16, %v230_v23  ;;  %p408_p13 = por %p407_p12, %p406_p11 }
  0x26   :  { %333 = vpow2.f32 %v55_v19  ;;  %v488_v10 = vsel %vm128_vm3, 1.0, %v431_v0  ;;  %vm179_vm5 = vcmask 1040384   ;;  %vm294_vm3 = vcmp.eq.s32.totalorder %v476_v57, 2 }
  0x27   :  { %v233_v30 = vsub.f32 %v228_v26, %v232_v27  ;;  %v253_v31 = vsub.f32 %v251_v28, %v252_v29  ;;  %335 = vpow2.f32 %v133_v25  ;;  %v67_v29 = vmax.f32 %v460_v2, 0.0  ;;  %p409_p0 = pnand %p408_p13, %p402_p10 }
  0x29   :  { %v234_v32 = vmax.f32 %v233_v30, 0.0  ;;  %v255_v34 = vrot.slane %v253_v31, 1 }
  0x2b   :  { %v236_v35 = vrot.slane %v234_v32, 1  ;;  %v257_v36 = vmul.f32 %v255_v34, %v253_v31  ;;  %v68_v34 = vmax.f32 %v462_v3, 0.0 }
  0x2d   :  { %v238_v37 = vmul.f32 %v236_v35, %v234_v32  ;;  %v258_v39 = vadd.f32 1e-07, %v257_v36 }
  0x2f   :  { %v247_v40 = vrot.slane %v238_v37, 6  ;;  %337 = vrcp.f32 %v258_v39 }
  0x31   :  { %v332_v41 = vpop.eup %331  ;;  %v249_v42 = vsub.f32 %v245_v38, %v247_v40 }
  0x32   :  { %v57_v43 = vadd.f32 1.0, %v332_v41  ;;  %v72_v4 = vmul.f32 -0.5, %v332_v41  ;;  %v75_v15 = vand.u32 2147483647, %v332_v41 }
  0x33   :  { %v469_v44 = vpop.eup %333  ;;  %v250_v45 = vadd.f32 1e-07, %v249_v42 }
  0x34   :  { %v471_v46 = vpop.eup %335  ;;  %v58_v47 = vadd.f32 1.0, %v469_v44  ;;  %339 = vrcp.f32 %v57_v43  ;;  %v81_v7 = vmul.f32 -0.5, %v469_v44  ;;  %v73_v12 = vadd.f32 1.0, %v72_v4 }
  0x35   :  { %341 = vrcp.f32 %v250_v45  ;;  %v135_v48 = vadd.f32 1.0, %v471_v46  ;;  %v84_v22 = vand.u32 2147483647, %v469_v44  ;;  %vm498_vm6 = vcmp.lt.f32.partialorder %v75_v15, 0.0004427343 }
  0x36   :  { %343 = vrcp.f32 %v58_v47  ;;  %v82_v17 = vadd.f32 1.0, %v81_v7  ;;  %v74_v24 = vmul.f32 %v332_v41, %v73_v12  ;;  %v138_v38 = vmul.f32 -0.5, %v471_v46 }
  0x37   :  { %345 = vrcp.f32 %v135_v48  ;;  %vm505_vm7 = vcmp.lt.f32.partialorder %v84_v22, 0.0004427343  ;;  %v141_v51 = vand.u32 2147483647, %v471_v46 }
  0x38   :  { %347 = vlog2.f32 %v57_v43  ;;  %v83_v28 = vmul.f32 %v469_v44, %v82_v17 }
  0x39   :  { %349 = vlog2.f32 %v58_v47  ;;  %vm142_vm14 = vcmp.lt.f32.partialorder %v141_v51, 0.0004427343 }
  0x3c   :  { %v338_v49 = vpop.eup %337 }
  0x3d   :  { %v267_v50 = vrot.slane %v338_v49, 6  ;;  %v139_v49 = vadd.f32 1.0, %v138_v38 }
  0x3f   :  { %v269_v53 = vmul.f32 %v267_v50, %v250_v45 }
  0x41   :  { %v340_v52 = vpop.eup %339  ;;  %v271_v63 = vrot.slane %v269_v53, 2 }
  0x42   :  { %v342_v54 = vpop.eup %341  ;;  %v63_v55 = vmul.f32 %v340_v52, %v332_v41 }
  0x43   :  { %v344_v56 = vpop.eup %343  ;;  %v262_v58 = vrot.slane %v342_v54, 2 }
  0x44   :  { %v64_v60 = vmul.f32 %v344_v56, %v469_v44  ;;  %v65_v61 = vsel %vm61_vm1, %v340_v52, %v63_v55  ;;  %v346_v5 = vpop.eup %345  ;;  %v153_v55 = vmax.f32 %v466_v11, 0.0  ;;  %vm287_vm1 = vcmp.eq.s32.totalorder %v476_v57, 0 }
  0x45   :  { %v264_v62 = vmul.f32 %v262_v58, %v238_v37  ;;  %351 = vrsqrt.f32 %v65_v61  ;;  %v148_v9 = vmul.f32 %v346_v5, %v471_v46  ;;  %v348_v13 = vpop.eup %347  ;;  %vm91_vm8 = vcmp.eq.f32.partialorder %v65_v61, inf }
  0x46   :  { %v66_v1 = vsel %vm62_vm2, %v344_v56, %v64_v60  ;;  %v350_v20 = vpop.eup %349  ;;  %v71_v23 = vmul.f32 0.6931472, %v348_v13  ;;  %v94_v33 = vand.u32 2147483648, %v65_v61  ;;  %vm93_vm9 = vcmp.eq.f32.partialorder %v65_v61, 0.0 }
  0x47   :  { %v316_v6 = vadd.f32 -1.0, %v264_v62  ;;  %353 = vrsqrt.f32 %v66_v1  ;;  %v149_v16 = vsel %vm144_vm4, %v346_v5, %v148_v9  ;;  %v80_v27 = vmul.f32 0.6931472, %v350_v20 }
  0x48   :  { %v150_v18 = vsub.f32 1.0, %v149_v16  ;;  %v490_v19 = vmax.f32 %v149_v16, 0.0  ;;  %355 = vlog2.f32 %v135_v48  ;;  %v77_v32 = vsel %vm498_vm6, %v74_v24, %v71_v23  ;;  %v109_v24 = vld [vmem:[#allocation2] sm:$0x1] }
  0x49   :  { %v273_v8 = vadd.f32 %v316_v6, %v271_v63  ;;  %v86_v37 = vsel %vm505_vm7, %v83_v28, %v80_v27  ;;  %vm98_vm10 = vcmp.eq.f32.partialorder %v66_v1, inf  ;;  %v101_v2 = vand.u32 2147483648, %v66_v1 }
  0x4a   :  { %v494_v0 = vmax.f32 %v150_v18, 0.0  ;;  %357 = vrsqrt.f32 %v490_v19  ;;  %v87_v39 = vadd.f32 %v77_v32, %v67_v29  ;;  %vm100_vm11 = vcmp.eq.f32.partialorder %v66_v1, 0.0 }
  0x4b   :  { %v274_v14 = vsub.f32 1.0, %v273_v8  ;;  %v88_v43 = vadd.f32 %v86_v37, %v68_v34  ;;  %vm169_vm12 = vcmp.eq.f32.partialorder %v490_v19, inf  ;;  %vm171_vm0 = vcmp.eq.f32.partialorder %v490_v19, 0.0 }
  0x4c   :  { %359 = vrsqrt.f32 %v494_v0  ;;  %vm158_vm13 = vcmp.eq.f32.partialorder %v494_v0, inf  ;;  %v161_v63 = vand.u32 2147483648, %v494_v0  ;;  %vm160_vm15 = vcmp.eq.f32.partialorder %v494_v0, 0.0 }
  0x4d   :  { %v275_v21 = vmul.f32 %v488_v10, %v274_v14  ;;  %v154_v6 = vsub.f32 %v153_v55, %v466_v11  ;;  %vm290_vm2 = vcmp.eq.s32.totalorder %v476_v57, 1 }
  0x4f   :  { %v276_v25 = vsel %vm179_vm5, %v275_v21, 0.0 }
  0x50   :  { %277 = vadd.xlane.f32.xlu1 %v276_v25 }
  0x52   :  { %v352_v31 = vpop.eup %351 }
  0x53   :  { %v90_v35 = vmul.f32 %v352_v31, %v65_v61 }
  0x54   :  { %v354_v36 = vpop.eup %353 }
  0x55   :  { %v92_v40 = vsel %vm91_vm8, %v65_v61, %v90_v35  ;;  %v97_v41 = vmul.f32 %v354_v36, %v66_v1  ;;  %v356_v50 = vpop.eup %355 }
  0x56   :  { %v95_v42 = vsel %vm93_vm9, %v94_v33, %v92_v40  ;;  %v137_v60 = vmul.f32 0.6931472, %v356_v50 }
  0x57   :  { %v99_v44 = vsel %vm98_vm10, %v66_v1, %v97_v41  ;;  %v103_v45 = vmul.f32 %v95_v42, %v65_v61  ;;  %v358_v52 = vpop.eup %357  ;;  %v140_v61 = vmul.f32 %v471_v46, %v139_v49 }
  0x58   :  { %v102_v47 = vsel %vm100_vm11, %v101_v2, %v99_v44  ;;  %v168_v56 = vmul.f32 %v358_v52, %v490_v19 }
  0x59   :  { %v104_v3 = vmul.f32 %v102_v47, %v66_v1  ;;  %v105_v48 = vmul.f32 %v103_v45, %v87_v39  ;;  %v360_v58 = vpop.eup %359  ;;  %v172_v1 = vand.u32 2147483648, %v490_v19  ;;  %v143_v8 = vsel %vm142_vm14, %v140_v61, %v137_v60 }
  0x5a   :  { %v157_v62 = vmul.f32 %v360_v58, %v494_v0  ;;  %v170_v5 = vsel %vm169_vm12, %v490_v19, %v168_v56  ;;  %v155_v14 = vadd.f32 %v154_v6, %v143_v8  ;;  %v166_v17 = vadd.f32 %v153_v55, %v143_v8 }
  0x5b   :  { %v106_v53 = vmul.f32 %v104_v3, %v88_v43  ;;  %v107_v54 = vmul.f32 0.75, %v105_v48  ;;  %v173_v12 = vsel %vm171_vm0, %v172_v1, %v170_v5 }
  0x5c   :  { %v159_v46 = vsel %vm158_vm13, %v494_v0, %v157_v62  ;;  %v174_v18 = vmul.f32 %v173_v12, %v490_v19 }
  0x5d   :  { %v108_v59 = vmul.f32 0.75, %v106_v53  ;;  %v162_v9 = vsel %vm160_vm15, %v161_v63, %v159_v46 }
  0x5e   :  { %v163_v16 = vmul.f32 %v162_v9, %v494_v0  ;;  %v175_v23 = vmul.f32 %v174_v18, %v166_v17 }
  0x5f   :  { %v110_v4 = vadd.f32 %v108_v59, %v107_v54 }
  0x60   :  { %v164_v22 = vmul.f32 %v163_v16, %v155_v14  ;;  %v176_v27 = vmul.f32 0.75, %v175_v23 }
  0x61   :  { %v111_v7 = vrot.slane %v110_v4, 4 }
  0x62   :  { %v165_v26 = vmul.f32 0.25, %v164_v22 }
  0x63   :  { %v112_v13 = vadd.f32 %v111_v7, %v110_v4 }
  0x64   :  { %v177_v28 = vsub.f32 %v165_v26, %v176_v27 }
  0x65   :  { %v113_v15 = vrot.slane %v112_v13, 2 }
  0x66   :  { %v190_v29 = vmul.f32 %v488_v10, %v177_v28 }
  0x67   :  { %v114_v20 = vadd.f32 %v113_v15, %v112_v13 }
  0x68   :  { %v191_v0 = vsel %vm179_vm5, %v190_v29, 0.0 }
  0x69   :  { %v115_v21 = vrot.slane %v114_v20, 1 }
  0x6b   :  { %v116_v11 = vadd.f32 %v115_v21, %v114_v20 }
  0x6d   :  { %v117_v25 = vadd.f32 %v116_v11, %v109_v24 }
  0x6f   :  { %118 = vst [vmem:[#allocation2] sm:$0x1] %v117_v25 }
  0x76   :  { %v178_v30 = vld [vmem:[#allocation2] sm:$0x1] }
  0x77   :  { %v180_v31 = vsel %vm179_vm5, %v178_v30, 0.0 }
  0x78   :  { %181 = vadd.xlane.f32.xlu0 %v180_v31 }
  0x7c   :  { %192 = vadd.xlane.f32.xlu0 %v191_v0 }
  0xad   :  { %v210_v19 = vpop.xlane.xlu1 %209 }
  0xae   :  { %v211_v33 = vrot.slane %v210_v19, 4 }
  0xb0   :  { %v212_v35 = vadd.f32 %v211_v33, %v210_v19 }
  0xb2   :  { %v213_v39 = vrot.slane %v212_v35, 2 }
  0xb4   :  { %v214_v45 = vadd.f32 %v213_v39, %v212_v35 }
  0xb6   :  { %v215_v51 = vrot.slane %v214_v45, 1 }
  0xb8   :  { %v216_v55 = vadd.f32 %v215_v51, %v214_v45 }
  0xd9   :  { %v278_v32 = vpop.xlane.xlu1 %277 }
  0xda   :  { %v279_v34 = vrot.slane %v278_v32, 4 }
  0xdc   :  { %v280_v37 = vadd.f32 %v279_v34, %v278_v32 }
  0xde   :  { %v281_v41 = vrot.slane %v280_v37, 2 }
  0xe0   :  { %v282_v47 = vadd.f32 %v281_v41, %v280_v37 }
  0xe2   :  { %v283_v53 = vrot.slane %v282_v47, 1 }
  0xe4   :  { %v284_v56 = vadd.f32 %v283_v53, %v282_v47 }
 0x101   :  { %v182_v36 = vpop.xlane.xlu0 %181 }
 0x102   :  { %v183_v2 = vrot.slane %v182_v36, 4 }
 0x104   :  { %v184_v38 = vadd.f32 %v183_v2, %v182_v36 }
 0x105   :  { %v193_v40 = vpop.xlane.xlu0 %192 }
 0x106   :  { %v185_v10 = vrot.slane %v184_v38, 2  ;;  %v194_v42 = vrot.slane %v193_v40, 4 }
 0x108   :  { %v195_v43 = vadd.f32 %v194_v42, %v193_v40  ;;  %v186_v44 = vadd.f32 %v185_v10, %v184_v38 }
 0x10a   :  { %v196_v3 = vrot.slane %v195_v43, 2  ;;  %v187_v48 = vrot.slane %v186_v44, 1 }
 0x10c   :  { %v197_v49 = vadd.f32 %v196_v3, %v195_v43  ;;  %v188_v50 = vadd.f32 %v187_v48, %v186_v44 }
 0x10e   :  { %317 = vpush %v188_v50  ;;  %v198_v52 = vrot.slane %v197_v49, 1 }
 0x110   :  { %v199_v54 = vadd.f32 %v198_v52, %v197_v49 }
 0x112   :  { %319 = vpush %v199_v54 }
 0x113   :  { %321 = vpush %v216_v55 }
 0x114   :  { %323 = vpush %v284_v56 }
 0x13f   :  { %s318_s0 = spop %317 }
 0x143   :  { %s320_s24 = spop %319 }
 0x144   :  { %s201_s25 = sadd.f32 %s320_s24, %s318_s0  ;;  %s322_s26 = spop %321 }
 0x145   :  { %s218_s27 = smul.f32 5.0, %s322_s26  ;;  %s324_s28 = spop %323 }
 0x146   :  { %v288_v58 = vstv %s201_s25  ;;  %s286_s29 = smul.f32 2.0, %s324_s28 }
 0x147   :  { %v289_v59 = vsel %vm287_vm1, %v288_v58, 0.0  ;;  %v291_v60 = vstv %s218_s27 }
 0x148   :  { %v292_v61 = vsel %vm290_vm2, %v291_v60, 0.0  ;;  %v295_v62 = vstv %s286_s29 }
 0x149   :  { %v293_v63 = vadd.f32 %v292_v61, %v289_v59  ;;  %v296_v1 = vsel %vm294_vm3, %v295_v62, 0.0 }
 0x14b   :  { %v297_v4 = vadd.f32 %v296_v1, %v293_v63 }
 0x14d   :  { %298 = vst [vmem:[#allocation10] sm:$0x1] %v297_v4 }
 0x14e   :  { %412 = shalt.err (!%p409_p0)
}
 0x14f   :  { %308 = dma.vmem_to_hbm [thread:$0]  %s306_s4, 16, %s543_s3, [#allocation7]  }
 0x150   :  { %425 = dma.done.wait [#allocation7], 16  }
 0x151   :  { %426 = vsyncadd [#allocation7], 4294967280 }
 0x152   :  { %312 = vsyncpa [#allocation6], 1 }
 0x153   :  { %313 = vsyncpa [#allocation9], 1 }
 0x154   :  { %314 = vsyncpa [#allocation7], 1 }

</bundles_post_ra>
